<compile_context>
chip_gen: v5e
topology: v5e:2x2
jax: 0.10.0
libtpu: 0.0.40
codegen_flags: <defaults>
</compile_context>

<pallas_src>
import functools

import jax
import jax.numpy as jnp
from jax import lax
from jax.experimental import pallas as pl
from jax.experimental.pallas import tpu as pltpu


def _round_up(n: int, m: int) -> int:
    return ((n + m - 1) // m) * m


def mlp1_kernel(x_ref, w_ref, b_ref, o_ref):
    # x: [TILE_B, n_mlp] (VMEM), w: [2, n_mlp] (VMEM, PyTorch-native layout),
    # b: [2] (SMEM scalars), o: [2, TILE_B] (VMEM, batch on the lane axis).
    x = x_ref[...].astype(jnp.float32)
    w = w_ref[...].astype(jnp.float32)

    # z^T = W @ x^T on the MXU: contract the feature axis of both operands.
    # Output [2, TILE_B] is lane-dense in the batch dimension.
    zt = lax.dot_general(
        w, x,
        dimension_numbers=(((1,), (1,)), ((), ())),
        preferred_element_type=jnp.float32,
    )  # [2, TILE_B]

    z0 = zt[0:1, :] + b_ref[0]
    z1 = zt[1:2, :] + b_ref[1]

    # leaky_relu (PyTorch default negative_slope = 0.01)
    z0 = jnp.where(z0 >= 0, z0, 0.01 * z0)
    z1 = jnp.where(z1 >= 0, z1, 0.01 * z1)

    # 2-class softmax over dim=1, numerically stable.  With the transposed
    # layout this is purely per-lane work: no cross-lane (XLU) reductions.
    m = jnp.maximum(z0, z1)
    e0 = jnp.exp(z0 - m)
    e1 = jnp.exp(z1 - m)
    s = e0 + e1
    o_ref[0:1, :] = (e0 / s).astype(o_ref.dtype)
    o_ref[1:2, :] = (e1 / s).astype(o_ref.dtype)


@functools.partial(jax.jit, static_argnames=("tile_b",))
def mlp_1_forward(x, w, b, *, tile_b=2048):
    """x: [B, n_mlp], w: [2, n_mlp] (PyTorch layout), b: [2] -> softmax probs [B, 2]."""
    B, n_mlp = x.shape
    assert w.shape == (2, n_mlp) and b.shape == (2,)

    # Batch tile: multiple of 128 (lane-dense output blocks), capped at tile_b.
    # With n_mlp lane-padded to 128, a 2048-row f32 tile is ~1 MiB per buffer,
    # so double-buffering fits comfortably on v5e/v6e/v7x.
    tile = min(tile_b, _round_up(B, 128))
    b_pad = _round_up(B, tile)
    if b_pad != B:
        x = jnp.pad(x, ((0, b_pad - B), (0, 0)))

    out_t = pl.pallas_call(
        mlp1_kernel,
        out_shape=jax.ShapeDtypeStruct((2, b_pad), jnp.float32),
        grid=(b_pad // tile,),
        in_specs=[
            pl.BlockSpec((tile, n_mlp), lambda i: (i, 0)),       # x: tiled over batch
            pl.BlockSpec((2, n_mlp), lambda i: (0, 0)),          # w: resident across grid
            pl.BlockSpec(memory_space=pltpu.MemorySpace.SMEM),   # b: SMEM scalars
        ],
        out_specs=pl.BlockSpec((2, tile), lambda i: (0, i)),     # lane-dense output
        compiler_params=pltpu.CompilerParams(
            dimension_semantics=("parallel",),   # megacore sharding on v7x, no-op on v5e/v6e
            vmem_limit_bytes=32 * 1024 * 1024,   # explicit, portable (v5e 16 MiB default)
        ),
    )(x, w, b)

    return out_t[:, :B].T  # back to [B, 2]


def _reference(x, w, b):
    z = x @ w.T + b
    z = jnp.where(z >= 0, z, 0.01 * z)
    return jax.nn.softmax(z, axis=1)


if __name__ == "__main__":
    key = jax.random.PRNGKey(0)
    k_x, k_w, k_b = jax.random.split(key, 3)

    B = 8         # batch
    n_mlp = 32    # input feature size of the MLP

    # Deterministic init mimicking torch.nn.Linear's default
    # U(-1/sqrt(n_mlp), 1/sqrt(n_mlp)) for both weight and bias.
    bound = 1.0 / jnp.sqrt(jnp.float32(n_mlp))
    w = jax.random.uniform(k_w, (2, n_mlp), jnp.float32, -bound, bound)  # PyTorch layout
    b = jax.random.uniform(k_b, (2,), jnp.float32, -bound, bound)
    x = jax.random.normal(k_x, (B, n_mlp), jnp.float32)

    out = mlp_1_forward(x, w, b)
    out = jax.block_until_ready(out)

    ref = _reference(x, w, b)
    assert out.shape == (B, 2)
    assert jnp.allclose(out, ref, atol=1e-5, rtol=1e-5)
    # rows sum to 1 (softmax sanity check)
    assert jnp.allclose(jnp.sum(out, axis=1), jnp.ones((B,)), atol=1e-5)

    print("KERNEL_OK")
</pallas_src>

<mosaic_0001>
module attributes {stable_mosaic.version = 11 : i64} {
  func.func @mlp1_kernel(%arg0: i32, %arg1: memref<128x32xf32, #tpu.memory_space<vmem>>, %arg2: memref<2x32xf32, #tpu.memory_space<vmem>>, %arg3: memref<2xf32, #tpu.memory_space<smem>>, %arg4: memref<2x128xf32, #tpu.memory_space<vmem>>) attributes {dimension_semantics = [#tpu.dimension_semantics<parallel>], iteration_bounds = array<i64: 1>, scalar_prefetch = 0 : i64, scratch_operands = 0 : i64, tpu.core_type = #tpu.core_type<tc>, window_params = [{transform_indices = @transform_0, window_bounds = array<i64: 128, 32>}, {pipeline_mode = #tpu.pipeline_mode<synchronous>, transform_indices = @transform_1, window_bounds = array<i64: 2, 32>}, {transform_indices = @transform_2, window_bounds = array<i64: 2>}, {transform_indices = @transform_3, window_bounds = array<i64: 2, 128>}]} {
    %c0 = arith.constant 0 : index
    %c0_0 = arith.constant 0 : index
    %0 = vector.load %arg1[%c0, %c0_0] : memref<128x32xf32, #tpu.memory_space<vmem>>, vector<128x32xf32>
    %c0_1 = arith.constant 0 : index
    %c0_2 = arith.constant 0 : index
    %1 = vector.load %arg2[%c0_1, %c0_2] : memref<2x32xf32, #tpu.memory_space<vmem>>, vector<2x32xf32>
    %cst = arith.constant dense<0.000000e+00> : vector<2x128xf32>
    %2 = tpu.matmul %1, %0, %cst {dimension_numbers = #tpu.dot_dimension_numbers<[1], [1], [0], [0], [0, 0, 1, 0], [], []>} : vector<2x32xf32>, vector<128x32xf32>, vector<2x128xf32> -> vector<2x128xf32>
    %3 = vector.extract_strided_slice %2 {offsets = [0, 0], sizes = [1, 128], strides = [1, 1]} : vector<2x128xf32> to vector<1x128xf32>
    %c0_3 = arith.constant 0 : index
    %4 = memref.load %arg3[%c0_3] : memref<2xf32, #tpu.memory_space<smem>>
    %5 = vector.broadcast %4 : f32 to vector<1x128xf32>
    %6 = arith.addf %3, %5 : vector<1x128xf32>
    %7 = vector.extract_strided_slice %2 {offsets = [1, 0], sizes = [1, 128], strides = [1, 1]} : vector<2x128xf32> to vector<1x128xf32>
    %c1 = arith.constant 1 : index
    %8 = memref.load %arg3[%c1] : memref<2xf32, #tpu.memory_space<smem>>
    %9 = vector.broadcast %8 : f32 to vector<1x128xf32>
    %10 = arith.addf %7, %9 : vector<1x128xf32>
    %cst_4 = arith.constant 0.000000e+00 : f32
    %11 = vector.broadcast %cst_4 : f32 to vector<1x128xf32>
    %12 = arith.cmpf oge, %6, %11 : vector<1x128xf32>
    %cst_5 = arith.constant 0.00999999977 : f32
    %13 = vector.broadcast %cst_5 : f32 to vector<1x128xf32>
    %14 = arith.mulf %13, %6 : vector<1x128xf32>
    %15 = arith.select %12, %6, %14 : vector<1x128xi1>, vector<1x128xf32>
    %cst_6 = arith.constant 0.000000e+00 : f32
    %16 = vector.broadcast %cst_6 : f32 to vector<1x128xf32>
    %17 = arith.cmpf oge, %10, %16 : vector<1x128xf32>
    %cst_7 = arith.constant 0.00999999977 : f32
    %18 = vector.broadcast %cst_7 : f32 to vector<1x128xf32>
    %19 = arith.mulf %18, %10 : vector<1x128xf32>
    %20 = arith.select %17, %10, %19 : vector<1x128xi1>, vector<1x128xf32>
    %21 = arith.maximumf %15, %20 : vector<1x128xf32>
    %22 = arith.subf %15, %21 : vector<1x128xf32>
    %23 = math.exp %22 : vector<1x128xf32>
    %24 = arith.subf %20, %21 : vector<1x128xf32>
    %25 = math.exp %24 : vector<1x128xf32>
    %26 = arith.addf %23, %25 : vector<1x128xf32>
    %27 = arith.divf %23, %26 : vector<1x128xf32>
    %c0_8 = arith.constant 0 : index
    %c0_9 = arith.constant 0 : index
    %28 = vector.load %arg4[%c0_8, %c0_9] : memref<2x128xf32, #tpu.memory_space<vmem>>, vector<1x128xf32>
    tpu.vector_store %arg4[%c0_8, %c0_9], %27 {strides = array<i32>} : memref<2x128xf32, #tpu.memory_space<vmem>>, vector<1x128xf32>,
    %29 = arith.divf %25, %26 : vector<1x128xf32>
    %c1_10 = arith.constant 1 : index
    %c0_11 = arith.constant 0 : index
    %30 = vector.load %arg4[%c1_10, %c0_11] : memref<2x128xf32, #tpu.memory_space<vmem>>, vector<1x128xf32>
    tpu.vector_store %arg4[%c1_10, %c0_11], %29 {strides = array<i32>} : memref<2x128xf32, #tpu.memory_space<vmem>>, vector<1x128xf32>,
    return
  }
  func.func @transform_0(%arg0: i32) -> (i32, i32) {
    %c0_i32 = arith.constant 0 : i32
    %c0_i32_0 = arith.constant 0 : i32
    return %arg0, %c0_i32 : i32, i32
  }
  func.func @transform_1(%arg0: i32) -> (i32, i32) {
    %c0_i32 = arith.constant 0 : i32
    %c0_i32_0 = arith.constant 0 : i32
    %c0_i32_1 = arith.constant 0 : i32
    return %c0_i32, %c0_i32_0 : i32, i32
  }
  func.func @transform_2(%arg0: i32) -> i32 {
    %c0_i32 = arith.constant 0 : i32
    %c0_i32_0 = arith.constant 0 : i32
    return %c0_i32 : i32
  }
  func.func @transform_3(%arg0: i32) -> (i32, i32) {
    %c0_i32 = arith.constant 0 : i32
    %c0_i32_0 = arith.constant 0 : i32
    return %c0_i32, %arg0 : i32, i32
  }
}

</mosaic_0001>

<bundles_post_ra>
// kernel: mlp_1_forward.1
= control target key start
LH: loop header
LB: loop body
LE: loop exit
PB: predicated region body
PF: predicated region fallthrough
CT: control target
= control target key end

     0   :  { %8 = vsyncpa [#allocation3], 0  ;;  %s226_s15 = smov [#allocation2]   ;;  %s324_s0 = inlined_call_operand.vmem [shape: f32[128,32], index: 0, kind: input, shape index: {}]   ;;  %s325_s1 = inlined_call_operand.vmem [shape: f32[2,32], index: 1, kind: input, shape index: {}]   ;;  %s326_s2 = inlined_call_operand.vmem [shape: f32[2], index: 2, kind: input, shape index: {}]   ;;  %s327_s3 = inlined_call_operand.vmem [shape: f32[2,128], index: 3, kind: output, shape index: {}]  }
   0x1   :  { %s18_s14 = sshll.u32 %s326_s2, 4  ;;  %s19_s14 = int_to_ptr.vmem [resolvable:$true] %s18_s14 }
   0x2   :  { %21 = dma.vmem_to_smem %s19_s14, 16, %s226_s15, [#allocation3]  }
   0x3   :  { %224 = dma.done.wait [#allocation3], 16  }
   0x4   :  { %225 = vsyncadd [#allocation3], 4294967280 }
   0x5   :  { %26 = sfence }
   0x6   :  { %v42_v0 = vld [vmem:[%s324_s0 + $0x78] sm:$0xff]  ;;  %vm44_vm0 = vcmask 261120   ;;  %v41_v1 = vld [vmem:[%s324_s0 + $0x70] sm:$0xff]  ;;  %v40_v2 = vld [vmem:[%s324_s0 + $0x68] sm:$0xff]  ;;  %s116_s21 = sld [smem:[#allocation2]] }
   0x7   :  { %185 = vmatpush.xpose.msk.msra.mxu0 %vm44_vm0, %v42_v0  ;;  %v39_v3 = vld [vmem:[%s324_s0 + $0x60] sm:$0xff]  ;;  %v38_v4 = vld [vmem:[%s324_s0 + $0x58] sm:$0xff]  ;;  %v37_v5 = vld [vmem:[%s324_s0 + $0x50] sm:$0xff]  ;;  %s202_s22 = sld [smem:[#allocation2 + $0x1]] }
   0x8   :  { %v36_v6 = vld [vmem:[%s324_s0 + $0x48] sm:$0xff]  ;;  %v35_v7 = vld [vmem:[%s324_s0 + $0x40] sm:$0xff]  ;;  %v34_v8 = vld [vmem:[%s324_s0 + $0x38] sm:$0xff] }
   0x9   :  { %v33_v9 = vld [vmem:[%s324_s0 + $0x30] sm:$0xff]  ;;  %v32_v10 = vld [vmem:[%s324_s0 + $0x28] sm:$0xff]  ;;  %v31_v11 = vld [vmem:[%s324_s0 + $0x20] sm:$0xff] }
   0xa   :  { %v30_v12 = vld [vmem:[%s324_s0 + $0x18] sm:$0xff]  ;;  %v29_v13 = vld [vmem:[%s324_s0 + $0x10] sm:$0xff]  ;;  %v28_v14 = vld [vmem:[%s324_s0 + $0x8] sm:$0xff] }
   0xb   :  { %186 = vmatpush.xpose.msk.msra.mxu0 %vm44_vm0, %v41_v1  ;;  %v27_v15 = vld [vmem:[%s324_s0] sm:$0xff] }
   0xc   :  { %v43_v16 = vld [vmem:[%s325_s1] sm:$0x3]  ;;  %v117_v17 = vstv %s116_s21 }
   0xd   :  { %v120_v18 = vstv %s202_s22 }
   0xf   :  { %187 = vmatpush.xpose.msk.msra.mxu0 %vm44_vm0, %v40_v2 }
  0x13   :  { %188 = vmatpush.xpose.msk.msra.mxu0 %vm44_vm0, %v39_v3 }
  0x17   :  { %189 = vmatpush.xpose.msk.msra.mxu0 %vm44_vm0, %v38_v4 }
  0x1b   :  { %190 = vmatpush.xpose.msk.msra.mxu0 %vm44_vm0, %v37_v5 }
  0x1f   :  { %191 = vmatpush.xpose.msk.msra.mxu0 %vm44_vm0, %v36_v6 }
  0x23   :  { %192 = vmatpush.xpose.msk.msra.mxu0 %vm44_vm0, %v35_v7 }
  0x27   :  { %193 = vmatpush.xpose.msk.msra.mxu0 %vm44_vm0, %v34_v8 }
  0x2b   :  { %194 = vmatpush.xpose.msk.msra.mxu0 %vm44_vm0, %v33_v9 }
  0x2f   :  { %195 = vmatpush.xpose.msk.msra.mxu0 %vm44_vm0, %v32_v10 }
  0x33   :  { %196 = vmatpush.xpose.msk.msra.mxu0 %vm44_vm0, %v31_v11 }
  0x37   :  { %197 = vmatpush.xpose.msk.msra.mxu0 %vm44_vm0, %v30_v12 }
  0x3b   :  { %198 = vmatpush.xpose.msk.msra.mxu0 %vm44_vm0, %v29_v13 }
  0x3f   :  { %199 = vmatpush.xpose.msk.msra.mxu0 %vm44_vm0, %v28_v14 }
  0x43   :  { %200 = vmatpush.xpose.msk.msra.mxu0 %vm44_vm0, %v27_v15 }
  0x46   :  { %201 = vmatmul.msk.f32.vlgmr.msra.gmra.mxu0 %vm44_vm0, %v43_v16 }
  0xc3   :  { %v113_v19 = vpop.f32.mrf.mxu0 }
  0xc4   :  { %v118_v20 = vadd.f32 %v117_v17, %v113_v19  ;;  %v121_v21 = vadd.f32 %v120_v18, %v113_v19 }
  0xc6   :  { %v123_v22 = vmul.f32 0.01, %v118_v20  ;;  %vm125_vm1 = vcmp.ge.f32.partialorder %v121_v21, 0.0  ;;  %v126_v23 = vmul.f32 0.01, %v121_v21  ;;  %vm122_vm2 = vcmp.ge.f32.partialorder %v118_v20, 0.0 }
  0xc8   :  { %v127_v24 = vsel %vm125_vm1, %v121_v21, %v126_v23  ;;  %v124_v26 = vsel %vm122_vm2, %v118_v20, %v123_v22 }
  0xc9   :  { %v129_v25 = vrot.slane %v127_v24, 1 }
  0xcb   :  { %v131_v27 = vmax.f32 %v124_v26, %v129_v25 }
  0xcd   :  { %v132_v28 = vsub.f32 %v124_v26, %v131_v27  ;;  %v136_v29 = vrot.slane %v131_v27, 7 }
  0xcf   :  { %v138_v30 = vsub.f32 %v127_v24, %v136_v29  ;;  %v133_v31 = vmul.f32 1.442695, %v132_v28 }
  0xd1   :  { %v139_v32 = vmul.f32 1.442695, %v138_v30 }
  0xd3   :  { %204 = vpow2.f32 %v139_v32 }
  0xd4   :  { %206 = vpow2.f32 %v133_v31 }
  0xd9   :  { %v205_v33 = vpop.eup %204 }
  0xda   :  { %v142_v34 = vrot.slane %v205_v33, 1  ;;  %v207_v35 = vpop.eup %206 }
  0xdc   :  { %v144_v36 = vadd.f32 %v207_v35, %v142_v34 }
  0xde   :  { %208 = vrcp.f32 %v144_v36  ;;  %v162_v37 = vrot.slane %v144_v36, 7  ;;  %v156_v42 = vand.u32 2147483648, %v144_v36  ;;  %v154_v45 = vand.u32 2147483647, %v144_v36 }
  0xdf   :  { %vm150_vm4 = vweird.f32 %v144_v36 }
  0xe0   :  { %210 = vrcp.f32 %v162_v37  ;;  %v175_v48 = vand.u32 2147483648, %v162_v37  ;;  %v157_v49 = vor.u32 1.1754944e-38, %v156_v42  ;;  %v173_v51 = vand.u32 2147483647, %v162_v37 }
  0xe1   :  { %vm155_vm7 = vcmp.eq.f32.partialorder %v154_v45, 8.507059e+37  ;;  %vm169_vm8 = vweird.f32 %v162_v37 }
  0xe2   :  { %v176_v56 = vor.u32 1.1754944e-38, %v175_v48  ;;  %vm174_vm10 = vcmp.eq.f32.partialorder %v173_v51, 8.507059e+37 }
  0xe4   :  { %v209_v38 = vpop.eup %208 }
  0xe5   :  { %v146_v39 = vmul.f32 %v209_v38, %v144_v36  ;;  %vm151_vm3 = vweird.f32 %v209_v38 }
  0xe6   :  { %v211_v40 = vpop.eup %210  ;;  %vm152_vm5 = vmor %vm150_vm4, %vm151_vm3 }
  0xe7   :  { %v147_v41 = vsub.f32 1.0, %v146_v39  ;;  %v165_v43 = vmul.f32 %v211_v40, %v162_v37  ;;  %vm170_vm6 = vweird.f32 %v211_v40 }
  0xe8   :  { %vm171_vm9 = vmor %vm169_vm8, %vm170_vm6 }
  0xe9   :  { %v148_v44 = vmul.f32 %v209_v38, %v147_v41  ;;  %v166_v46 = vsub.f32 1.0, %v165_v43 }
  0xeb   :  { %v149_v47 = vadd.f32 %v209_v38, %v148_v44  ;;  %v167_v50 = vmul.f32 %v211_v40, %v166_v46 }
  0xed   :  { %v153_v52 = vsel %vm152_vm5, %v209_v38, %v149_v47  ;;  %v168_v54 = vadd.f32 %v211_v40, %v167_v50 }
  0xee   :  { %v158_v53 = vsel %vm155_vm7, %v157_v49, %v153_v52 }
  0xef   :  { %v159_v55 = vmul.f32 %v207_v35, %v158_v53  ;;  %v172_v57 = vsel %vm171_vm9, %v211_v40, %v168_v54 }
  0xf0   :  { %v177_v58 = vsel %vm174_vm10, %v176_v56, %v172_v57 }
  0xf1   :  { %160 = vst [vmem:[%s327_s3] sm:$0x1] %v159_v55  ;;  %v178_v59 = vmul.f32 %v205_v33, %v177_v58 }
  0xf3   :  { %179 = vst [vmem:[%s327_s3] sm:$0x2] %v178_v59 }
  0xf4   :  { %184 = vsyncpa [#allocation3], 1 }

</bundles_post_ra>
